<compile_context>
chip_gen: v6e
topology: v6e:2x2x1
jax: 0.10.0
libtpu: 0.0.40
codegen_flags: <defaults>
</compile_context>

<pallas_src>
import jax
import jax.numpy as jnp
from jax.experimental import pallas as pl
from jax.experimental.pallas import tpu as pltpu


def _round_up(a, b):
    return (a + b - 1) // b * b


def _cdiv(a, b):
    return (a + b - 1) // b


def adaptor_kernel(x_ref, w1_ref, b1_ref, w2_ref, b2_ref, o_ref, h_ref):
    # x_ref:  (tm, d_in)  bf16     w1_ref: (d_in, ffn) bf16   b1_ref: (1, ffn) f32
    # w2_ref: (ffn, tn)   bf16     b2_ref: (1, tn)     f32
    # o_ref:  (tm, tn)    out_dtype
    # h_ref:  (tm, ffn)   bf16 VMEM scratch (ReLU activations, reused over j)
    #
    # Grid = (row_tiles, llm_col_tiles); j (axis 1) is innermost & "arbitrary"
    # so the h scratch written at j == 0 stays valid for all llm column tiles.
    @pl.when(pl.program_id(1) == 0)
    def _():
        h = jnp.dot(x_ref[...], w1_ref[...],
                    preferred_element_type=jnp.float32)
        h_ref[...] = jnp.maximum(h + b1_ref[...], 0.0).astype(h_ref.dtype)

    y = jnp.dot(h_ref[...], w2_ref[...], preferred_element_type=jnp.float32)
    o_ref[...] = (y + b2_ref[...]).astype(o_ref.dtype)


def linear_adaptor(x, w1, b1, w2, b2, k, *, tm=512, tn=512):
    """Forward pass of the `Linear` adaptor.

    x:  (B, S, D)
    w1: (D*k, ffn), b1: (ffn,)
    w2: (ffn, llm), b2: (llm,)
    returns (B, S // k, llm) in x.dtype
    """
    B, S, D = x.shape
    out_dtype = x.dtype
    out_itemsize = out_dtype.itemsize
    T = S // k
    x = x[:, : T * k, :]                       # discard trailing S % k frames
    d_in = D * k
    ffn = w1.shape[1]
    llm = w2.shape[1]

    x2 = x.reshape(B * T, d_in)
    M = B * T

    # ---- generation-aware VMEM budget --------------------------------------
    try:
        phys_vmem = int(pltpu.get_tpu_info().vmem_capacity_bytes)
    except Exception:
        phys_vmem = 64 * 1024 * 1024           # conservative (v7x per-TC)
    vmem_cap = int(phys_vmem * 0.9)            # ~10% headroom

    # ---- llm (output) tiling: lane-dense, prefer resident w2 ---------------
    llm_p = _round_up(llm, 128)
    w2_resident = (ffn * llm_p * 2 <= vmem_cap // 4) and (llm_p <= 4096)
    if w2_resident:
        tn = llm_p                             # constant block index -> one DMA
    else:
        llm_p = _round_up(llm, 256)            # 256-wide tiles for 2x256x256 MXU
        for cand in (tn, 512, 256):
            if cand <= llm_p and llm_p % cand == 0:
                tn = cand
                break
        else:
            tn = 256
    if llm_p != llm:
        w2 = jnp.pad(w2, ((0, 0), (0, llm_p - llm)))
        b2 = jnp.pad(b2, (0, llm_p - llm))

    # ---- row tiling ---------------------------------------------------------
    tm = min(tm, _round_up(M, 8))              # don't over-tile tiny problems
    if M > 512:
        # keep >= 2 row tiles so the "parallel" row axis can feed both
        # TensorCores on v7x
        tm = min(tm, _round_up(_cdiv(M, 2), 256))

    def _vmem_est(tm_):
        w2_bufs = 1 if w2_resident else 2
        return (2 * tm_ * d_in * 2                       # x tile (bf16, dbl-buffered)
                + 1 * d_in * ffn * 2                     # w1 (bf16, single-buffered)
                + 1 * _round_up(ffn, 128) * 4            # b1 (f32)
                + w2_bufs * ffn * tn * 2                 # w2 tile (bf16)
                + w2_bufs * _round_up(tn, 128) * 4       # b2 tile (f32)
                + 2 * tm_ * tn * out_itemsize            # out tile (dbl-buffered)
                + tm_ * ffn * 2)                         # h scratch (bf16)

    # shrink tm if the footprint would not fit this generation's VMEM
    while _vmem_est(tm) > vmem_cap and tm > 64:
        tm = max(64, _round_up(tm // 2, 8))
    # TODO(synk): if still over the cap (pathological ffn/llm), tile the ffn
    # contraction dimension as well instead of only shrinking tm.

    M_pad = _round_up(M, tm)
    if M_pad != M:
        x2 = jnp.pad(x2, ((0, M_pad - M), (0, 0)))

    # ---- bf16 matmul inputs, f32 biases -------------------------------------
    x2 = x2.astype(jnp.bfloat16)
    w1c = w1.astype(jnp.bfloat16)
    w2c = w2.astype(jnp.bfloat16)
    b1c = b1.reshape(1, ffn).astype(jnp.float32)
    b2c = b2.reshape(1, llm_p).astype(jnp.float32)

    grid = (M_pad // tm, llm_p // tn)
    n_row_tiles = grid[0]

    vmem_est = _vmem_est(tm)
    vmem_limit = max(32 << 20, min(int(vmem_est * 1.25) + (4 << 20), vmem_cap))

    w2_hbm_passes = 1 if w2_resident else n_row_tiles
    cost = pl.CostEstimate(
        flops=2 * M_pad * d_in * ffn + 2 * M_pad * ffn * llm_p,
        transcendentals=0,
        bytes_accessed=(x2.size * 2 + w1c.size * 2 + b1c.size * 4
                        + (w2c.size * 2 + b2c.size * 4) * w2_hbm_passes
                        + M_pad * llm_p * out_itemsize),
    )

    def _call(single_buffer_resident):
        def resident_spec(shape, index_map):
            if single_buffer_resident:
                return pl.BlockSpec(shape, index_map,
                                    pipeline_mode=pl.Buffered(1))
            return pl.BlockSpec(shape, index_map)

        w1_spec = resident_spec((d_in, ffn), lambda i, j: (0, 0))
        b1_spec = resident_spec((1, ffn), lambda i, j: (0, 0))
        if w2_resident:
            w2_spec = resident_spec((ffn, tn), lambda i, j: (0, j))
            b2_spec = resident_spec((1, tn), lambda i, j: (0, j))
        else:
            w2_spec = pl.BlockSpec((ffn, tn), lambda i, j: (0, j))
            b2_spec = pl.BlockSpec((1, tn), lambda i, j: (0, j))

        return pl.pallas_call(
            adaptor_kernel,
            out_shape=jax.ShapeDtypeStruct((M_pad, llm_p), out_dtype),
            grid_spec=pltpu.PrefetchScalarGridSpec(
                num_scalar_prefetch=0,
                grid=grid,
                in_specs=[
                    pl.BlockSpec((tm, d_in), lambda i, j: (i, 0)),   # x rows
                    w1_spec,                                         # w1 resident
                    b1_spec,                                         # b1 resident
                    w2_spec,                                         # w2 col tile
                    b2_spec,                                         # b2 col tile
                ],
                out_specs=pl.BlockSpec((tm, tn), lambda i, j: (i, j)),
                scratch_shapes=[pltpu.VMEM((tm, ffn), jnp.bfloat16)],
            ),
            compiler_params=pltpu.CompilerParams(
                # row axis independent -> "parallel" (shards across v7x's 2 TCs);
                # llm axis reuses the h scratch written at j == 0 -> "arbitrary".
                # Do NOT reorder the grid to (j, i) or mark j "parallel".
                dimension_semantics=("parallel", "arbitrary"),
                vmem_limit_bytes=vmem_limit,
            ),
            cost_estimate=cost,
        )(x2, w1c, b1c, w2c, b2c)

    try:
        out = _call(True)
    except Exception:
        # This JAX build rejected pipeline_mode=pl.Buffered(1); fall back to
        # the default double-buffered pipeline for the resident operands.
        out = _call(False)

    out = out[:M, :llm]
    return out.reshape(B, T, llm)


if __name__ == "__main__":
    # Small, module-consistent shapes.
    downsample_rate = 2          # k
    encoder_dim = 32             # D
    llm_dim = 48
    ffn_dim = 64
    B, S = 2, 17                 # S % k == 1 -> exercises the frame discard

    key = jax.random.PRNGKey(0)
    kx, k1, k2, k3, k4 = jax.random.split(key, 5)

    d_in = encoder_dim * downsample_rate
    x = jax.random.normal(kx, (B, S, encoder_dim), dtype=jnp.float32)
    # Deterministic synthetic parameters (nn.Linear-like scale).
    w1 = jax.random.uniform(k1, (d_in, ffn_dim), jnp.float32,
                            -1.0 / jnp.sqrt(d_in), 1.0 / jnp.sqrt(d_in))
    b1 = jax.random.uniform(k2, (ffn_dim,), jnp.float32,
                            -1.0 / jnp.sqrt(d_in), 1.0 / jnp.sqrt(d_in))
    w2 = jax.random.uniform(k3, (ffn_dim, llm_dim), jnp.float32,
                            -1.0 / jnp.sqrt(ffn_dim), 1.0 / jnp.sqrt(ffn_dim))
    b2 = jax.random.uniform(k4, (llm_dim,), jnp.float32,
                            -1.0 / jnp.sqrt(ffn_dim), 1.0 / jnp.sqrt(ffn_dim))

    y = linear_adaptor(x, w1, b1, w2, b2, downsample_rate)
    y = jax.block_until_ready(y)
    assert y.shape == (B, S // downsample_rate, llm_dim)
    assert y.dtype == x.dtype

    # Pure-JAX reference with the same bf16-in / f32-accumulate recipe.
    T = S // downsample_rate
    x_ref = x[:, : T * downsample_rate, :].reshape(B, T, d_in)
    h_ref = jnp.dot(x_ref.astype(jnp.bfloat16), w1.astype(jnp.bfloat16),
                    preferred_element_type=jnp.float32) + b1
    h_ref = jnp.maximum(h_ref, 0.0)
    ref = jnp.dot(h_ref.astype(jnp.bfloat16), w2.astype(jnp.bfloat16),
                  preferred_element_type=jnp.float32) + b2
    assert jnp.allclose(y.astype(jnp.float32), ref, atol=2e-2, rtol=2e-2), (
        float(jnp.max(jnp.abs(y.astype(jnp.float32) - ref))))

    # Sanity vs. full-f32 math (looser, bf16 rounding of inputs).
    ref_f32 = jnp.maximum(x_ref @ w1 + b1, 0.0) @ w2 + b2
    assert jnp.allclose(y.astype(jnp.float32), ref_f32, atol=1e-1, rtol=5e-2)

    print("KERNEL_OK")
</pallas_src>

<mosaic_0001>
module attributes {stable_mosaic.version = 11 : i64} {
  func.func @adaptor_kernel(%arg0: i32, %arg1: i32, %arg2: memref<16x64xbf16, #tpu.memory_space<vmem>>, %arg3: memref<64x64xbf16, #tpu.memory_space<vmem>>, %arg4: memref<1x64xf32, #tpu.memory_space<vmem>>, %arg5: memref<64x128xbf16, #tpu.memory_space<vmem>>, %arg6: memref<1x128xf32, #tpu.memory_space<vmem>>, %arg7: memref<16x128xf32, #tpu.memory_space<vmem>>, %arg8: memref<16x64xbf16, #tpu.memory_space<vmem>>) attributes {dimension_semantics = [#tpu.dimension_semantics<parallel>, #tpu.dimension_semantics<arbitrary>], iteration_bounds = array<i64: 1, 1>, scalar_prefetch = 0 : i64, scratch_operands = 1 : i64, tpu.core_type = #tpu.core_type<tc>, window_params = [{transform_indices = @transform_0, window_bounds = array<i64: 16, 64>}, {pipeline_mode = #tpu.pipeline_mode<synchronous>, transform_indices = @transform_1, window_bounds = array<i64: 64, 64>}, {pipeline_mode = #tpu.pipeline_mode<synchronous>, transform_indices = @transform_2, window_bounds = array<i64: 1, 64>}, {pipeline_mode = #tpu.pipeline_mode<synchronous>, transform_indices = @transform_3, window_bounds = array<i64: 64, 128>}, {pipeline_mode = #tpu.pipeline_mode<synchronous>, transform_indices = @transform_4, window_bounds = array<i64: 1, 128>}, {transform_indices = @transform_5, window_bounds = array<i64: 16, 128>}]} {
    %c0_i32 = arith.constant 0 : i32
    %0 = arith.cmpi eq, %arg1, %c0_i32 : i32
    %1 = arith.extui %0 : i1 to i32
    %c0_i32_0 = arith.constant 0 : i32
    %2 = arith.cmpi ne, %1, %c0_i32_0 : i32
    scf.if %2 {
      %c0_8 = arith.constant 0 : index
      %c0_9 = arith.constant 0 : index
      %10 = vector.load %arg2[%c0_8, %c0_9] : memref<16x64xbf16, #tpu.memory_space<vmem>>, vector<16x64xbf16>
      %c0_10 = arith.constant 0 : index
      %c0_11 = arith.constant 0 : index
      %11 = vector.load %arg3[%c0_10, %c0_11] : memref<64x64xbf16, #tpu.memory_space<vmem>>, vector<64x64xbf16>
      %cst_12 = arith.constant dense<0.000000e+00> : vector<16x64xf32>
      %12 = tpu.matmul %10, %11, %cst_12 {dimension_numbers = #tpu.dot_dimension_numbers<[1], [0], [0], [1], [0, 0, 1, 1], [], []>} : vector<16x64xbf16>, vector<64x64xbf16>, vector<16x64xf32> -> vector<16x64xf32>
      %c0_13 = arith.constant 0 : index
      %c0_14 = arith.constant 0 : index
      %13 = vector.load %arg4[%c0_13, %c0_14] : memref<1x64xf32, #tpu.memory_space<vmem>>, vector<1x64xf32>
      %14 = vector.broadcast %13 : vector<1x64xf32> to vector<16x64xf32>
      %15 = arith.addf %12, %14 : vector<16x64xf32>
      %cst_15 = arith.constant 0.000000e+00 : f32
      %16 = vector.broadcast %cst_15 : f32 to vector<16x64xf32>
      %17 = arith.maximumf %15, %16 : vector<16x64xf32>
      %18 = arith.truncf %17 : vector<16x64xf32> to vector<16x64xbf16>
      %c0_16 = arith.constant 0 : index
      %c0_17 = arith.constant 0 : index
      %19 = vector.load %arg8[%c0_16, %c0_17] : memref<16x64xbf16, #tpu.memory_space<vmem>>, vector<16x64xbf16>
      tpu.vector_store %arg8[%c0_16, %c0_17], %18 {strides = array<i32>} : memref<16x64xbf16, #tpu.memory_space<vmem>>, vector<16x64xbf16>,
    } else {
    }
    %c0 = arith.constant 0 : index
    %c0_1 = arith.constant 0 : index
    %3 = vector.load %arg8[%c0, %c0_1] : memref<16x64xbf16, #tpu.memory_space<vmem>>, vector<16x64xbf16>
    %c0_2 = arith.constant 0 : index
    %c0_3 = arith.constant 0 : index
    %4 = vector.load %arg5[%c0_2, %c0_3] : memref<64x128xbf16, #tpu.memory_space<vmem>>, vector<64x128xbf16>
    %cst = arith.constant dense<0.000000e+00> : vector<16x128xf32>
    %5 = tpu.matmul %3, %4, %cst {dimension_numbers = #tpu.dot_dimension_numbers<[1], [0], [0], [1], [0, 0, 1, 1], [], []>} : vector<16x64xbf16>, vector<64x128xbf16>, vector<16x128xf32> -> vector<16x128xf32>
    %c0_4 = arith.constant 0 : index
    %c0_5 = arith.constant 0 : index
    %6 = vector.load %arg6[%c0_4, %c0_5] : memref<1x128xf32, #tpu.memory_space<vmem>>, vector<1x128xf32>
    %7 = vector.broadcast %6 : vector<1x128xf32> to vector<16x128xf32>
    %8 = arith.addf %5, %7 : vector<16x128xf32>
    %c0_6 = arith.constant 0 : index
    %c0_7 = arith.constant 0 : index
    %9 = vector.load %arg7[%c0_6, %c0_7] : memref<16x128xf32, #tpu.memory_space<vmem>>, vector<16x128xf32>
    tpu.vector_store %arg7[%c0_6, %c0_7], %8 {strides = array<i32>} : memref<16x128xf32, #tpu.memory_space<vmem>>, vector<16x128xf32>,
    return
  }
  func.func @transform_0(%arg0: i32, %arg1: i32) -> (i32, i32) {
    %c0_i32 = arith.constant 0 : i32
    %c0_i32_0 = arith.constant 0 : i32
    return %arg0, %c0_i32 : i32, i32
  }
  func.func @transform_1(%arg0: i32, %arg1: i32) -> (i32, i32) {
    %c0_i32 = arith.constant 0 : i32
    %c0_i32_0 = arith.constant 0 : i32
    %c0_i32_1 = arith.constant 0 : i32
    return %c0_i32, %c0_i32_0 : i32, i32
  }
  func.func @transform_2(%arg0: i32, %arg1: i32) -> (i32, i32) {
    %c0_i32 = arith.constant 0 : i32
    %c0_i32_0 = arith.constant 0 : i32
    %c0_i32_1 = arith.constant 0 : i32
    return %c0_i32, %c0_i32_0 : i32, i32
  }
  func.func @transform_3(%arg0: i32, %arg1: i32) -> (i32, i32) {
    %c0_i32 = arith.constant 0 : i32
    %c0_i32_0 = arith.constant 0 : i32
    return %c0_i32, %arg1 : i32, i32
  }
  func.func @transform_4(%arg0: i32, %arg1: i32) -> (i32, i32) {
    %c0_i32 = arith.constant 0 : i32
    %c0_i32_0 = arith.constant 0 : i32
    return %c0_i32, %arg1 : i32, i32
  }
  func.func @transform_5(%arg0: i32, %arg1: i32) -> (i32, i32) {
    %c0_i32 = arith.constant 0 : i32
    return %arg0, %arg1 : i32, i32
  }
}

module attributes {stable_mosaic.version = 11 : i64} {
  func.func @adaptor_kernel(%arg0: i32, %arg1: i32, %arg2: memref<16x64xbf16, #tpu.memory_space<vmem>>, %arg3: memref<64x64xbf16, #tpu.memory_space<vmem>>, %arg4: memref<1x64xf32, #tpu.memory_space<vmem>>, %arg5: memref<64x128xbf16, #tpu.memory_space<vmem>>, %arg6: memref<1x128xf32, #tpu.memory_space<vmem>>, %arg7: memref<16x128xf32, #tpu.memory_space<vmem>>, %arg8: memref<16x64xbf16, #tpu.memory_space<vmem>>) attributes {dimension_semantics = [#tpu.dimension_semantics<parallel>, #tpu.dimension_semantics<arbitrary>], iteration_bounds = array<i64: 1, 1>, scalar_prefetch = 0 : i64, scratch_operands = 1 : i64, tpu.core_type = #tpu.core_type<tc>, window_params = [{transform_indices = @transform_0, window_bounds = array<i64: 16, 64>}, {pipeline_mode = #tpu.pipeline_mode<synchronous>, transform_indices = @transform_1, window_bounds = array<i64: 64, 64>}, {pipeline_mode = #tpu.pipeline_mode<synchronous>, transform_indices = @transform_2, window_bounds = array<i64: 1, 64>}, {transform_indices = @transform_3, window_bounds = array<i64: 64, 128>}, {transform_indices = @transform_4, window_bounds = array<i64: 1, 128>}, {transform_indices = @transform_5, window_bounds = array<i64: 16, 128>}]} {
    %c0_i32 = arith.constant 0 : i32
    %0 = arith.cmpi eq, %arg1, %c0_i32 : i32
    %1 = arith.extui %0 : i1 to i32
    %c0_i32_0 = arith.constant 0 : i32
    %2 = arith.cmpi ne, %1, %c0_i32_0 : i32
    scf.if %2 {
      %c0_8 = arith.constant 0 : index
      %c0_9 = arith.constant 0 : index
      %10 = vector.load %arg2[%c0_8, %c0_9] : memref<16x64xbf16, #tpu.memory_space<vmem>>, vector<16x64xbf16>
      %c0_10 = arith.constant 0 : index
      %c0_11 = arith.constant 0 : index
      %11 = vector.load %arg3[%c0_10, %c0_11] : memref<64x64xbf16, #tpu.memory_space<vmem>>, vector<64x64xbf16>
      %cst_12 = arith.constant dense<0.000000e+00> : vector<16x64xf32>
      %12 = tpu.matmul %10, %11, %cst_12 {dimension_numbers = #tpu.dot_dimension_numbers<[1], [0], [0], [1], [0, 0, 1, 1], [], []>} : vector<16x64xbf16>, vector<64x64xbf16>, vector<16x64xf32> -> vector<16x64xf32>
      %c0_13 = arith.constant 0 : index
      %c0_14 = arith.constant 0 : index
      %13 = vector.load %arg4[%c0_13, %c0_14] : memref<1x64xf32, #tpu.memory_space<vmem>>, vector<1x64xf32>
      %14 = vector.broadcast %13 : vector<1x64xf32> to vector<16x64xf32>
      %15 = arith.addf %12, %14 : vector<16x64xf32>
      %cst_15 = arith.constant 0.000000e+00 : f32
      %16 = vector.broadcast %cst_15 : f32 to vector<16x64xf32>
      %17 = arith.maximumf %15, %16 : vector<16x64xf32>
      %18 = arith.truncf %17 : vector<16x64xf32> to vector<16x64xbf16>
      %c0_16 = arith.constant 0 : index
      %c0_17 = arith.constant 0 : index
      %19 = vector.load %arg8[%c0_16, %c0_17] : memref<16x64xbf16, #tpu.memory_space<vmem>>, vector<16x64xbf16>
      tpu.vector_store %arg8[%c0_16, %c0_17], %18 {strides = array<i32>} : memref<16x64xbf16, #tpu.memory_space<vmem>>, vector<16x64xbf16>,
    } else {
    }
    %c0 = arith.constant 0 : index
    %c0_1 = arith.constant 0 : index
    %3 = vector.load %arg8[%c0, %c0_1] : memref<16x64xbf16, #tpu.memory_space<vmem>>, vector<16x64xbf16>
    %c0_2 = arith.constant 0 : index
    %c0_3 = arith.constant 0 : index
    %4 = vector.load %arg5[%c0_2, %c0_3] : memref<64x128xbf16, #tpu.memory_space<vmem>>, vector<64x128xbf16>
    %cst = arith.constant dense<0.000000e+00> : vector<16x128xf32>
    %5 = tpu.matmul %3, %4, %cst {dimension_numbers = #tpu.dot_dimension_numbers<[1], [0], [0], [1], [0, 0, 1, 1], [], []>} : vector<16x64xbf16>, vector<64x128xbf16>, vector<16x128xf32> -> vector<16x128xf32>
    %c0_4 = arith.constant 0 : index
    %c0_5 = arith.constant 0 : index
    %6 = vector.load %arg6[%c0_4, %c0_5] : memref<1x128xf32, #tpu.memory_space<vmem>>, vector<1x128xf32>
    %7 = vector.broadcast %6 : vector<1x128xf32> to vector<16x128xf32>
    %8 = arith.addf %5, %7 : vector<16x128xf32>
    %c0_6 = arith.constant 0 : index
    %c0_7 = arith.constant 0 : index
    %9 = vector.load %arg7[%c0_6, %c0_7] : memref<16x128xf32, #tpu.memory_space<vmem>>, vector<16x128xf32>
    tpu.vector_store %arg7[%c0_6, %c0_7], %8 {strides = array<i32>} : memref<16x128xf32, #tpu.memory_space<vmem>>, vector<16x128xf32>,
    return
  }
  func.func @transform_0(%arg0: i32, %arg1: i32) -> (i32, i32) {
    %c0_i32 = arith.constant 0 : i32
    %c0_i32_0 = arith.constant 0 : i32
    return %arg0, %c0_i32 : i32, i32
  }
  func.func @transform_1(%arg0: i32, %arg1: i32) -> (i32, i32) {
    %c0_i32 = arith.constant 0 : i32
    %c0_i32_0 = arith.constant 0 : i32
    %c0_i32_1 = arith.constant 0 : i32
    return %c0_i32, %c0_i32_0 : i32, i32
  }
  func.func @transform_2(%arg0: i32, %arg1: i32) -> (i32, i32) {
    %c0_i32 = arith.constant 0 : i32
    %c0_i32_0 = arith.constant 0 : i32
    %c0_i32_1 = arith.constant 0 : i32
    return %c0_i32, %c0_i32_0 : i32, i32
  }
  func.func @transform_3(%arg0: i32, %arg1: i32) -> (i32, i32) {
    %c0_i32 = arith.constant 0 : i32
    %c0_i32_0 = arith.constant 0 : i32
    return %c0_i32, %arg1 : i32, i32
  }
  func.func @transform_4(%arg0: i32, %arg1: i32) -> (i32, i32) {
    %c0_i32 = arith.constant 0 : i32
    %c0_i32_0 = arith.constant 0 : i32
    return %c0_i32, %arg1 : i32, i32
  }
  func.func @transform_5(%arg0: i32, %arg1: i32) -> (i32, i32) {
    %c0_i32 = arith.constant 0 : i32
    return %arg0, %arg1 : i32, i32
  }
}

</mosaic_0001>

<bundles_post_ra>
// kernel: tpu_custom_call.1
= control target key start
LH: loop header
LB: loop body
LE: loop exit
PB: predicated region body
PF: predicated region fallthrough
CT: control target
= control target key end

     0   :  { %10 = vsyncpa [#allocation4], 0  ;;  %s500_s0 = inlined_call_operand.hbm [shape: bf16[16,64], index: 0, kind: input, shape index: {}]   ;;  %s501_s1 = inlined_call_operand.hbm [shape: bf16[64,64], index: 1, kind: input, shape index: {}]   ;;  %s502_s2 = inlined_call_operand.vmem [shape: f32[1,64], index: 2, kind: input, shape index: {}]   ;;  %s503_s3 = inlined_call_operand.hbm [shape: bf16[64,128], index: 3, kind: input, shape index: {}]   ;;  %s504_s4 = inlined_call_operand.vmem [shape: f32[1,128], index: 4, kind: input, shape index: {}]   ;;  %s505_s5 = inlined_call_operand.hbm [shape: f32[16,128], index: 5, kind: output, shape index: {}]  }
   0x1   :  { %11 = vsyncpa [#allocation7], 0 }
   0x2   :  { %12 = vsyncpa [#allocation5], 0  ;;  %s440_s18 = smov [#allocation6]   ;;  %s441_s20 = smov [#allocation3]  }
   0x3   :  { %s30_s19 = sshll.u32 %s440_s18, 4  ;;  %s18_s21 = sshll.u32 %s441_s20, 4  ;;  %s31_s19 = int_to_ptr.vmem [resolvable:$true] %s30_s19  ;;  %s19_s21 = int_to_ptr.vmem [resolvable:$true] %s18_s21 }
   0x4   :  { %s362_s22 = scalar_lea.vmem %s31_s19, 512  ;;  %p367_p1 = scmp.lt.s32.totalorder %s31_s19, %s31_s19 }
   0x5   :  { %p363_p0 = scmp.ne.s32.totalorder %s31_s19, %s362_s22  ;;  %p368_p2 = scmp.lt.s32.totalorder %s362_s22, %s362_s22 }
   0x7   :  { %p369_p3 = por %p368_p2, %p367_p1 }
   0x9   :  { %p370_p4 = pnand %p369_p3, %p363_p0 }
   0xb   :  { %373 = shalt.err (!%p370_p4)
}
   0xc   :  { %s442_s23 = smov 64   ;;  %s443_s24 = smov 4  }
   0xd   :  { %36 = dma.hbm_to_vmem [thread:$0]  %s501_s1, 512, %s31_s19, [#allocation7], %s442_s23, %s442_s23, %s443_s24  }
   0xe   :  { %s382_s27 = scalar_lea.vmem %s19_s21, 128  ;;  %p387_p6 = scmp.lt.s32.totalorder %s19_s21, %s19_s21 }
   0xf   :  { %p383_p5 = scmp.ne.s32.totalorder %s19_s21, %s382_s27  ;;  %p388_p7 = scmp.lt.s32.totalorder %s382_s27, %s382_s27 }
  0x11   :  { %p389_p8 = por %p388_p7, %p387_p6 }
  0x13   :  { %p390_p9 = pnand %p389_p8, %p383_p5 }
  0x15   :  { %393 = shalt.err (!%p390_p9)
}
  0x16   :  { %24 = dma.hbm_to_vmem [thread:$0]  %s500_s0, 128, %s19_s21, [#allocation4], %s442_s23, %s442_s23, %s443_s24  }
  0x17   :  { %s444_s30 = smov [#allocation8]  }
  0x18   :  { %s44_s6 = sshll.u32 %s444_s30, 4  ;;  %s45_s6 = int_to_ptr.vmem [resolvable:$true] %s44_s6 }
  0x19   :  { %s402_s7 = scalar_lea.vmem %s45_s6, 512  ;;  %p407_p11 = scmp.lt.s32.totalorder %s45_s6, %s45_s6 }
  0x1a   :  { %p403_p10 = scmp.ne.s32.totalorder %s45_s6, %s402_s7  ;;  %p408_p12 = scmp.lt.s32.totalorder %s402_s7, %s402_s7 }
  0x1c   :  { %p409_p13 = por %p408_p12, %p407_p11 }
  0x1e   :  { %p410_p0 = pnand %p409_p13, %p403_p10 }
  0x20   :  { %413 = shalt.err (!%p410_p0)
}
  0x21   :  { %50 = dma.hbm_to_vmem [thread:$0]  %s503_s3, 512, %s45_s6, [#allocation7], %s442_s23, %s442_s23, %s443_s24  }
  0x22   :  { %434 = dma.done.wait [#allocation4], 128  }
  0x23   :  { %435 = vsyncadd [#allocation4], 4294967168 }
  0x24   :  { %436 = dma.done.wait [#allocation7], 1024  }
  0x25   :  { %437 = vsyncadd [#allocation7], 4294966272  ;;  %v445_v0 = vmov 0.0   ;;  %vm446_vm0 = vmmov 0   ;;  %v344_v1 = vld [vmem:[#allocation6 + $0x18] sm:$0xff]   ;;  %v345_v2 = vld [vmem:[#allocation6 + $0x10] sm:$0xff]  }
  0x26   :  { %310 = vmatprep.subr.bf16.mxu0 %v445_v0  ;;  %318 = vmatprep.mubr.msk.bf16.mxu0 %vm446_vm0, %v445_v0  ;;  %v346_v3 = vld [vmem:[#allocation6 + $0x8] sm:$0xff]   ;;  %v347_v4 = vld [vmem:[#allocation6] sm:$0xff]   ;;  %v348_v5 = vld [vmem:[#allocation3] sm:$0xff]   ;;  %vm113_vm1 = vcmask 523264   ;;  %vm168_vm2 = vcmask 519168  }
  0x27   :  { %322 = vmatprep.subr.bf16.mxu1 %v445_v0  ;;  %330 = vmatprep.mubr.msk.bf16.mxu1 %vm446_vm0, %v445_v0  ;;  %v349_v6 = vld [vmem:[#allocation8 + $0x18] sm:$0xff]   ;;  %v350_v7 = vld [vmem:[#allocation8 + $0x10] sm:$0xff]   ;;  %v351_v8 = vld [vmem:[#allocation8 + $0x8] sm:$0xff]  }
  0x28   :  { %311 = vmatpush3.bf16.msra.mxu0 %v344_v1  ;;  %323 = vmatpush3.bf16.msra.mxu1 %v349_v6  ;;  %v352_v9 = vld [vmem:[#allocation8] sm:$0xff]   ;;  %v282_v10 = vld [vmem:[%s502_s2] ss:$0 sm:$0xff]  ;;  %s447_s2 = smov [#allocation9]  }
  0x29   :  { %312 = vmatprep.subr.bf16.mxu0 %v445_v0  ;;  %324 = vmatprep.subr.bf16.mxu1 %v445_v0  ;;  %v291_v22 = vld [vmem:[%s504_s4] ss:$0 sm:$0xff]  ;;  %s269_s11 = sshll.u32 %s447_s2, 4  ;;  %s270_s11 = int_to_ptr.vmem [resolvable:$true] %s269_s11 }
  0x2a   :  { %s414_s12 = scalar_lea.vmem %s270_s11, 256  ;;  %p419_p2 = scmp.lt.s32.totalorder %s270_s11, %s270_s11 }
  0x2b   :  { %p415_p1 = scmp.ne.s32.totalorder %s270_s11, %s414_s12  ;;  %p420_p3 = scmp.lt.s32.totalorder %s414_s12, %s414_s12 }
  0x2c   :  { %313 = vmatpush3.bf16.msra.mxu0 %v345_v2  ;;  %325 = vmatpush3.bf16.msra.mxu1 %v350_v7 }
  0x2d   :  { %314 = vmatprep.subr.bf16.mxu0 %v445_v0  ;;  %326 = vmatprep.subr.bf16.mxu1 %v445_v0  ;;  %p421_p4 = por %p420_p3, %p419_p2 }
  0x2f   :  { %p422_p5 = pnand %p421_p4, %p415_p1 }
  0x30   :  { %315 = vmatpush3.bf16.msra.mxu0 %v346_v3  ;;  %327 = vmatpush3.bf16.msra.mxu1 %v351_v8 }
  0x31   :  { %316 = vmatprep.subr.bf16.mxu0 %v445_v0  ;;  %328 = vmatprep.subr.bf16.mxu1 %v445_v0 }
  0x34   :  { %317 = vmatpush3.bf16.msra.mxu0 %v347_v4  ;;  %329 = vmatpush3.bf16.msra.mxu1 %v352_v9 }
  0x37   :  { %319 = vmatmul.mubr.msk.bf16.vlgmr.msra.gmra.mxu0 %vm113_vm1, %v348_v5 }
  0xf7   :  { %v151_v11 = vpop.f32.mrf.mxu0 }
  0xf8   :  { %v152_v12 = vadd.f32 %v282_v10, %v151_v11 }
  0xf9   :  { %v320_v13 = vpop.f32.mrf.mxu0 }
  0xfa   :  { %v158_v14 = vmax.f32 %v152_v12, 0.0 }
  0xfb   :  { %v154_v15 = vpop.f32.mrf.mxu0 }
  0xfc   :  { %v298_v16 = vpack.c.bf16 %v158_v14, %v158_v14  ;;  %v155_v17 = vadd.f32 %v282_v10, %v154_v15 }
  0xfd   :  { %v321_v18 = vpop.f32.mrf.mxu0 }
  0xfe   :  { %169 = vst.msk [vmem:[#allocation2] sm:$0xf] %vm168_vm2, %v298_v16  ;;  %v159_v19 = vmax.f32 %v155_v17, 0.0 }
 0x100   :  { %v299_v20 = vpack.c.bf16 %v159_v19, %v159_v19 }
 0x102   :  { %170 = vst.msk [vmem:[#allocation2 + $0x4] sm:$0xf] %vm168_vm2, %v299_v20 }
 0x109   :  { %v353_v21 = vld [vmem:[#allocation2] sm:$0xff]  }
 0x10a   :  { %331 = vmatmul.mubr.msk.bf16.vlgmr.msra.gmra.mxu1 %vm113_vm1, %v353_v21 }
 0x1ca   :  { %v255_v23 = vpop.f32.mrf.mxu1 }
 0x1cb   :  { %v256_v24 = vadd.f32 %v291_v22, %v255_v23 }
 0x1cc   :  { %v332_v25 = vpop.f32.mrf.mxu1 }
 0x1cd   :  { %262 = vst [vmem:[#allocation9] sm:$0xff] %v256_v24 }
 0x1ce   :  { %v258_v26 = vpop.f32.mrf.mxu1 }
 0x1cf   :  { %v259_v27 = vadd.f32 %v291_v22, %v258_v26 }
 0x1d0   :  { %v333_v28 = vpop.f32.mrf.mxu1 }
 0x1d1   :  { %263 = vst [vmem:[#allocation9 + $0x8] sm:$0xff] %v259_v27 }
 0x1d2   :  { %425 = shalt.err (!%p422_p5)
}
 0x1d3   :  { %s448_s13 = smov 128   ;;  %s449_s4 = smov 8  }
 0x1d4   :  { %275 = dma.vmem_to_hbm [thread:$0]  %s270_s11, 256, %s505_s5, [#allocation5], %s448_s13, %s448_s13, %s449_s4  }
 0x1d5   :  { %438 = dma.done.wait [#allocation5], 256  }
 0x1d6   :  { %439 = vsyncadd [#allocation5], 4294967040 }
 0x1d7   :  { %279 = vsyncpa [#allocation4], 1 }
 0x1d8   :  { %280 = vsyncpa [#allocation7], 1 }
 0x1d9   :  { %281 = vsyncpa [#allocation5], 1 }

// kernel: tpu_custom_call.1
= control target key start
LH: loop header
LB: loop body
LE: loop exit
PB: predicated region body
PF: predicated region fallthrough
CT: control target
= control target key end

     0   :  { %10 = vsyncpa [#allocation4], 0  ;;  %s500_s0 = inlined_call_operand.hbm [shape: bf16[16,64], index: 0, kind: input, shape index: {}]   ;;  %s501_s1 = inlined_call_operand.hbm [shape: bf16[64,64], index: 1, kind: input, shape index: {}]   ;;  %s502_s2 = inlined_call_operand.vmem [shape: f32[1,64], index: 2, kind: input, shape index: {}]   ;;  %s503_s3 = inlined_call_operand.hbm [shape: bf16[64,128], index: 3, kind: input, shape index: {}]   ;;  %s504_s4 = inlined_call_operand.vmem [shape: f32[1,128], index: 4, kind: input, shape index: {}]   ;;  %s505_s5 = inlined_call_operand.hbm [shape: f32[16,128], index: 5, kind: output, shape index: {}]  }
   0x1   :  { %11 = vsyncpa [#allocation7], 0 }
   0x2   :  { %12 = vsyncpa [#allocation5], 0  ;;  %s440_s18 = smov [#allocation6]   ;;  %s441_s20 = smov [#allocation3]  }
   0x3   :  { %s30_s19 = sshll.u32 %s440_s18, 4  ;;  %s18_s21 = sshll.u32 %s441_s20, 4  ;;  %s31_s19 = int_to_ptr.vmem [resolvable:$true] %s30_s19  ;;  %s19_s21 = int_to_ptr.vmem [resolvable:$true] %s18_s21 }
   0x4   :  { %s362_s22 = scalar_lea.vmem %s31_s19, 512  ;;  %p367_p1 = scmp.lt.s32.totalorder %s31_s19, %s31_s19 }
   0x5   :  { %p363_p0 = scmp.ne.s32.totalorder %s31_s19, %s362_s22  ;;  %p368_p2 = scmp.lt.s32.totalorder %s362_s22, %s362_s22 }
   0x7   :  { %p369_p3 = por %p368_p2, %p367_p1 }
   0x9   :  { %p370_p4 = pnand %p369_p3, %p363_p0 }
   0xb   :  { %373 = shalt.err (!%p370_p4)
}
   0xc   :  { %s442_s23 = smov 64   ;;  %s443_s24 = smov 4  }
   0xd   :  { %36 = dma.hbm_to_vmem [thread:$0]  %s501_s1, 512, %s31_s19, [#allocation7], %s442_s23, %s442_s23, %s443_s24  }
   0xe   :  { %s382_s27 = scalar_lea.vmem %s19_s21, 128  ;;  %p387_p6 = scmp.lt.s32.totalorder %s19_s21, %s19_s21 }
   0xf   :  { %p383_p5 = scmp.ne.s32.totalorder %s19_s21, %s382_s27  ;;  %p388_p7 = scmp.lt.s32.totalorder %s382_s27, %s382_s27 }
  0x11   :  { %p389_p8 = por %p388_p7, %p387_p6 }
  0x13   :  { %p390_p9 = pnand %p389_p8, %p383_p5 }
  0x15   :  { %393 = shalt.err (!%p390_p9)
}
  0x16   :  { %24 = dma.hbm_to_vmem [thread:$0]  %s500_s0, 128, %s19_s21, [#allocation4], %s442_s23, %s442_s23, %s443_s24  }
  0x17   :  { %s444_s30 = smov [#allocation8]  }
  0x18   :  { %s44_s6 = sshll.u32 %s444_s30, 4  ;;  %s45_s6 = int_to_ptr.vmem [resolvable:$true] %s44_s6 }
  0x19   :  { %s402_s7 = scalar_lea.vmem %s45_s6, 512  ;;  %p407_p11 = scmp.lt.s32.totalorder %s45_s6, %s45_s6 }
  0x1a   :  { %p403_p10 = scmp.ne.s32.totalorder %s45_s6, %s402_s7  ;;  %p408_p12 = scmp.lt.s32.totalorder %s402_s7, %s402_s7 }
  0x1c   :  { %p409_p13 = por %p408_p12, %p407_p11 }
  0x1e   :  { %p410_p0 = pnand %p409_p13, %p403_p10 }
  0x20   :  { %413 = shalt.err (!%p410_p0)
}
  0x21   :  { %50 = dma.hbm_to_vmem [thread:$0]  %s503_s3, 512, %s45_s6, [#allocation7], %s442_s23, %s442_s23, %s443_s24  }
  0x22   :  { %434 = dma.done.wait [#allocation4], 128  }
  0x23   :  { %435 = vsyncadd [#allocation4], 4294967168 }
  0x24   :  { %436 = dma.done.wait [#allocation7], 1024  }
  0x25   :  { %437 = vsyncadd [#allocation7], 4294966272  ;;  %v445_v0 = vmov 0.0   ;;  %vm446_vm0 = vmmov 0   ;;  %v344_v1 = vld [vmem:[#allocation6 + $0x18] sm:$0xff]   ;;  %v345_v2 = vld [vmem:[#allocation6 + $0x10] sm:$0xff]  }
  0x26   :  { %310 = vmatprep.subr.bf16.mxu0 %v445_v0  ;;  %318 = vmatprep.mubr.msk.bf16.mxu0 %vm446_vm0, %v445_v0  ;;  %v346_v3 = vld [vmem:[#allocation6 + $0x8] sm:$0xff]   ;;  %v347_v4 = vld [vmem:[#allocation6] sm:$0xff]   ;;  %v348_v5 = vld [vmem:[#allocation3] sm:$0xff]   ;;  %vm113_vm1 = vcmask 523264   ;;  %vm168_vm2 = vcmask 519168  }
  0x27   :  { %322 = vmatprep.subr.bf16.mxu1 %v445_v0  ;;  %330 = vmatprep.mubr.msk.bf16.mxu1 %vm446_vm0, %v445_v0  ;;  %v349_v6 = vld [vmem:[#allocation8 + $0x18] sm:$0xff]   ;;  %v350_v7 = vld [vmem:[#allocation8 + $0x10] sm:$0xff]   ;;  %v351_v8 = vld [vmem:[#allocation8 + $0x8] sm:$0xff]  }
  0x28   :  { %311 = vmatpush3.bf16.msra.mxu0 %v344_v1  ;;  %323 = vmatpush3.bf16.msra.mxu1 %v349_v6  ;;  %v352_v9 = vld [vmem:[#allocation8] sm:$0xff]   ;;  %v282_v10 = vld [vmem:[%s502_s2] ss:$0 sm:$0xff]  ;;  %s447_s2 = smov [#allocation9]  }
  0x29   :  { %312 = vmatprep.subr.bf16.mxu0 %v445_v0  ;;  %324 = vmatprep.subr.bf16.mxu1 %v445_v0  ;;  %v291_v22 = vld [vmem:[%s504_s4] ss:$0 sm:$0xff]  ;;  %s269_s11 = sshll.u32 %s447_s2, 4  ;;  %s270_s11 = int_to_ptr.vmem [resolvable:$true] %s269_s11 }
  0x2a   :  { %s414_s12 = scalar_lea.vmem %s270_s11, 256  ;;  %p419_p2 = scmp.lt.s32.totalorder %s270_s11, %s270_s11 }
  0x2b   :  { %p415_p1 = scmp.ne.s32.totalorder %s270_s11, %s414_s12  ;;  %p420_p3 = scmp.lt.s32.totalorder %s414_s12, %s414_s12 }
  0x2c   :  { %313 = vmatpush3.bf16.msra.mxu0 %v345_v2  ;;  %325 = vmatpush3.bf16.msra.mxu1 %v350_v7 }
  0x2d   :  { %314 = vmatprep.subr.bf16.mxu0 %v445_v0  ;;  %326 = vmatprep.subr.bf16.mxu1 %v445_v0  ;;  %p421_p4 = por %p420_p3, %p419_p2 }
  0x2f   :  { %p422_p5 = pnand %p421_p4, %p415_p1 }
  0x30   :  { %315 = vmatpush3.bf16.msra.mxu0 %v346_v3  ;;  %327 = vmatpush3.bf16.msra.mxu1 %v351_v8 }
  0x31   :  { %316 = vmatprep.subr.bf16.mxu0 %v445_v0  ;;  %328 = vmatprep.subr.bf16.mxu1 %v445_v0 }
  0x34   :  { %317 = vmatpush3.bf16.msra.mxu0 %v347_v4  ;;  %329 = vmatpush3.bf16.msra.mxu1 %v352_v9 }
  0x37   :  { %319 = vmatmul.mubr.msk.bf16.vlgmr.msra.gmra.mxu0 %vm113_vm1, %v348_v5 }
  0xf7   :  { %v151_v11 = vpop.f32.mrf.mxu0 }
  0xf8   :  { %v152_v12 = vadd.f32 %v282_v10, %v151_v11 }
  0xf9   :  { %v320_v13 = vpop.f32.mrf.mxu0 }
  0xfa   :  { %v158_v14 = vmax.f32 %v152_v12, 0.0 }
  0xfb   :  { %v154_v15 = vpop.f32.mrf.mxu0 }
  0xfc   :  { %v298_v16 = vpack.c.bf16 %v158_v14, %v158_v14  ;;  %v155_v17 = vadd.f32 %v282_v10, %v154_v15 }
  0xfd   :  { %v321_v18 = vpop.f32.mrf.mxu0 }
  0xfe   :  { %169 = vst.msk [vmem:[#allocation2] sm:$0xf] %vm168_vm2, %v298_v16  ;;  %v159_v19 = vmax.f32 %v155_v17, 0.0 }
 0x100   :  { %v299_v20 = vpack.c.bf16 %v159_v19, %v159_v19 }
 0x102   :  { %170 = vst.msk [vmem:[#allocation2 + $0x4] sm:$0xf] %vm168_vm2, %v299_v20 }
 0x109   :  { %v353_v21 = vld [vmem:[#allocation2] sm:$0xff]  }
 0x10a   :  { %331 = vmatmul.mubr.msk.bf16.vlgmr.msra.gmra.mxu1 %vm113_vm1, %v353_v21 }
 0x1ca   :  { %v255_v23 = vpop.f32.mrf.mxu1 }
 0x1cb   :  { %v256_v24 = vadd.f32 %v291_v22, %v255_v23 }
 0x1cc   :  { %v332_v25 = vpop.f32.mrf.mxu1 }
 0x1cd   :  { %262 = vst [vmem:[#allocation9] sm:$0xff] %v256_v24 }
 0x1ce   :  { %v258_v26 = vpop.f32.mrf.mxu1 }
 0x1cf   :  { %v259_v27 = vadd.f32 %v291_v22, %v258_v26 }
 0x1d0   :  { %v333_v28 = vpop.f32.mrf.mxu1 }
 0x1d1   :  { %263 = vst [vmem:[#allocation9 + $0x8] sm:$0xff] %v259_v27 }
 0x1d2   :  { %425 = shalt.err (!%p422_p5)
}
 0x1d3   :  { %s448_s13 = smov 128   ;;  %s449_s4 = smov 8  }
 0x1d4   :  { %275 = dma.vmem_to_hbm [thread:$0]  %s270_s11, 256, %s505_s5, [#allocation5], %s448_s13, %s448_s13, %s449_s4  }
 0x1d5   :  { %438 = dma.done.wait [#allocation5], 256  }
 0x1d6   :  { %439 = vsyncadd [#allocation5], 4294967040 }
 0x1d7   :  { %279 = vsyncpa [#allocation4], 1 }
 0x1d8   :  { %280 = vsyncpa [#allocation7], 1 }
 0x1d9   :  { %281 = vsyncpa [#allocation5], 1 }

</bundles_post_ra>
